<compile_context>
chip_gen: v5e
topology: v5e:2x2
jax: 0.10.0
libtpu: 0.0.40
codegen_flags: <defaults>
</compile_context>

<pallas_src>
import math

import jax
import jax.numpy as jnp
from jax.experimental import pallas as pl
from jax.experimental.pallas import tpu as pltpu


def _pick_q_tile(seq_len: int, target: int = 512) -> int:
    """Largest multiple-of-8 divisor of seq_len not exceeding `target`."""
    if seq_len <= target:
        return seq_len
    best = None
    for t in range(8, target + 1, 8):
        if seq_len % t == 0:
            best = t
    return best if best is not None else seq_len


def _default_vmem_limit_bytes() -> int:
    """~80% of physical VMEM (leave headroom); 64 MiB fallback."""
    try:
        cap = pltpu.get_tpu_info().vmem_capacity_bytes
        return int(cap * 0.8)
    except Exception:
        return 64 * 1024 * 1024


def _make_attention_kernel(*, head_dim: int, seq_len: int, q_tile: int,
                           with_attn: bool):
    inv_sqrt_d = 1.0 / math.sqrt(head_dim)
    hd = head_dim

    def kernel(x_ref, wq_ref, bq_ref, wkv_ref, bkv_ref, wo_ref, bo_ref,
               out_ref, *rest):
        if with_attn:
            attn_ref, kv_scratch = rest
        else:
            (kv_scratch,) = rest

        qi = pl.program_id(1)                    # query-tile index
        n = pl.program_id(2)                     # head index (reduction axis)
        cd = x_ref.dtype                         # MXU compute dtype (bf16/f32)

        # Project K/V for the FULL sequence of this (batch, head) once, at the
        # first query tile; fused K|V weight -> single [S,H]@[H,2hd] dot.
        @pl.when(qi == 0)
        def _project_kv():
            kv = (jnp.dot(x_ref[0], wkv_ref[n],
                          preferred_element_type=jnp.float32) + bkv_ref[n])
            kv_scratch[n] = kv.astype(cd)

        # Query projection on this tile's rows only; 1/sqrt(d) folded in once.
        if q_tile == seq_len:
            x_tile = x_ref[0]                                        # [tq, H]
        else:
            row0 = pl.multiple_of(qi * q_tile, q_tile)
            x_tile = x_ref[0, pl.ds(row0, q_tile), :]
        q = (jnp.dot(x_tile, wq_ref[n], preferred_element_type=jnp.float32)
             + bq_ref[n]) * inv_sqrt_d                               # [tq, hd]

        kv = kv_scratch[n]                                           # [S, 2hd]
        k = kv[:, :hd]
        v = kv[:, hd:]

        # scores[i, j] = sum_d q[i, d] * k[j, d]   (contract last dims, no .T)
        scores = jax.lax.dot_general(
            q.astype(cd), k, dimension_numbers=(((1,), (1,)), ((), ())),
            preferred_element_type=jnp.float32)                      # [tq, S]

        # Numerically-stable softmax in f32; reciprocal on the EUP slot.
        scores = scores - jnp.max(scores, axis=-1, keepdims=True)
        ex = jnp.exp(scores)
        denom = jnp.sum(ex, axis=-1, keepdims=True)

        if with_attn:
            # The [tq,S] slab must be materialized for writeback anyway.
            attn = ex * pl.reciprocal(denom, approx=True)
            attn_ref[0, 0] = attn.astype(attn_ref.dtype)
            ctx = jnp.dot(attn.astype(cd), v,
                          preferred_element_type=jnp.float32)        # [tq, hd]
        else:
            # Skip the S^2 normalization: scale the [tq,hd] context instead.
            ctx = jnp.dot(ex.astype(cd), v,
                          preferred_element_type=jnp.float32)
            ctx = ctx * pl.reciprocal(denom, approx=True)

        # Per-head slice of the output projection, accumulated into the
        # head-resident output block (init with bias at head 0).
        contrib = jnp.dot(ctx.astype(cd), wo_ref[n],
                          preferred_element_type=jnp.float32)        # [tq, H]

        @pl.when(n == 0)
        def _init():
            out_ref[0] = jnp.broadcast_to(
                bo_ref[...], out_ref.shape[1:]).astype(out_ref.dtype)

        out_ref[0] += contrib.astype(out_ref.dtype)

    return kernel


def virality_attention(x, params, *, num_heads,
                       compute_dtype=jnp.bfloat16,
                       attn_weights_dtype=jnp.bfloat16,
                       return_attn_weights=True,
                       q_tile=None,
                       vmem_limit_bytes=None):
    """x: [B, S, H]. params: dict of [in,out] weights / [1,H] biases.

    Returns (output [B,S,H] f32, attn_weights [B,nh,S,S] or None).
    compute_dtype narrows MXU operands (softmax/accumulation stay f32);
    attn_weights_dtype controls the (large) attention-weights writeback.
    """
    B, S, H = x.shape
    assert H % num_heads == 0
    hd = H // num_heads
    tq = q_tile if q_tile is not None else _pick_q_tile(S)
    assert S % tq == 0 and (tq % 8 == 0 or tq == S)
    n_qt = S // tq
    if vmem_limit_bytes is None:
        vmem_limit_bytes = _default_vmem_limit_bytes()

    # Pre-split weights per head in the wrapper (cheap XLA ops) so the kernel
    # never lane-slices weights or concatenates head outputs.
    def split_w(w):   # [H, H] -> [nh, H, hd]  (columns of head n)
        return w.reshape(H, num_heads, hd).transpose(1, 0, 2)

    def split_b(b):   # [1, H] -> [nh, 1, hd]
        return b.reshape(num_heads, 1, hd)

    wq_h = split_w(params["wq"]).astype(compute_dtype)
    wkv_h = jnp.concatenate([split_w(params["wk"]), split_w(params["wv"])],
                            axis=-1).astype(compute_dtype)            # [nh,H,2hd]
    bq_h = split_b(params["bq"]).astype(jnp.float32)
    bkv_h = jnp.concatenate([split_b(params["bk"]), split_b(params["bv"])],
                            axis=-1).astype(jnp.float32)              # [nh,1,2hd]
    wo_h = params["wo"].reshape(num_heads, hd, H).astype(compute_dtype)  # rows/head
    bo = params["bo"].astype(jnp.float32)                             # [1, H]
    x_c = x.astype(compute_dtype)

    # Resident (constant-index) specs: DMA'd once, stay in VMEM for all steps.
    def resident(shape):
        return pl.BlockSpec(shape, lambda b, qi, n, _s=len(shape): (0,) * _s)

    in_specs = [
        pl.BlockSpec((1, S, H), lambda b, qi, n: (b, 0, 0)),   # x (1 DMA / batch)
        resident((num_heads, H, hd)),                          # wq  (all heads)
        resident((num_heads, 1, hd)),                          # bq
        resident((num_heads, H, 2 * hd)),                      # w_kv (fused)
        resident((num_heads, 1, 2 * hd)),                      # b_kv
        resident((num_heads, hd, H)),                          # wo
        resident((1, H)),                                      # bo
    ]

    out_specs = [pl.BlockSpec((1, tq, H), lambda b, qi, n: (b, qi, 0))]
    out_shape = [jax.ShapeDtypeStruct((B, S, H), jnp.float32)]
    if return_attn_weights:
        out_specs.append(
            pl.BlockSpec((1, 1, tq, S), lambda b, qi, n: (b, n, qi, 0)))
        out_shape.append(
            jax.ShapeDtypeStruct((B, num_heads, S, S), attn_weights_dtype))

    grid_spec = pltpu.PrefetchScalarGridSpec(
        num_scalar_prefetch=0,
        grid=(B, n_qt, num_heads),
        in_specs=in_specs,
        out_specs=out_specs,
        # K/V for all heads of the current batch, resident across query tiles.
        scratch_shapes=[pltpu.VMEM((num_heads, S, 2 * hd), compute_dtype)],
    )

    kernel = _make_attention_kernel(head_dim=hd, seq_len=S, q_tile=tq,
                                    with_attn=return_attn_weights)

    results = pl.pallas_call(
        kernel,
        out_shape=out_shape,
        grid_spec=grid_spec,
        compiler_params=pltpu.CompilerParams(
            # Batch axis parallel (megacore / v7x 2 TCs).  The query-tile and
            # head axes must stay sequential: kv_scratch is filled at qi == 0
            # and the output block accumulates over heads.
            dimension_semantics=("parallel", "arbitrary", "arbitrary"),
            vmem_limit_bytes=vmem_limit_bytes),
    )(x_c, wq_h, bq_h, wkv_h, bkv_h, wo_h, bo)

    if return_attn_weights:
        return results[0], results[1]
    return results[0], None


def _reference(x, params, num_heads):
    """Pure-JAX reference mirroring the PyTorch forward (eval mode)."""
    B, S, H = x.shape
    hd = H // num_heads

    def proj(w, b):
        return x @ w + b[0]

    q = proj(params["wq"], params["bq"]).reshape(B, S, num_heads, hd).transpose(0, 2, 1, 3)
    k = proj(params["wk"], params["bk"]).reshape(B, S, num_heads, hd).transpose(0, 2, 1, 3)
    v = proj(params["wv"], params["bv"]).reshape(B, S, num_heads, hd).transpose(0, 2, 1, 3)
    scores = jnp.einsum("bhqd,bhkd->bhqk", q, k) / math.sqrt(hd)
    attn = jax.nn.softmax(scores, axis=-1)
    out = jnp.einsum("bhqk,bhkd->bhqd", attn, v).transpose(0, 2, 1, 3).reshape(B, S, H)
    out = out @ params["wo"] + params["bo"][0]
    return out, attn


if __name__ == "__main__":
    # Small shapes consistent with the module's forward: x [B, S, hidden].
    B, S, H = 2, 8, 32
    num_heads = 8  # head_dim = 4

    key = jax.random.PRNGKey(0)
    keys = jax.random.split(key, 9)
    init = lambda k, shape: (0.02 * jax.random.normal(k, shape)).astype(jnp.float32)

    params = {
        "wq": init(keys[0], (H, H)), "bq": init(keys[1], (1, H)),
        "wk": init(keys[2], (H, H)), "bk": init(keys[3], (1, H)),
        "wv": init(keys[4], (H, H)), "bv": init(keys[5], (1, H)),
        "wo": init(keys[6], (H, H)), "bo": init(keys[7], (1, H)),
    }
    x = jax.random.normal(keys[8], (B, S, H), dtype=jnp.float32)

    ref_out, ref_attn = _reference(x, params, num_heads)

    # --- f32 path (strict check) ---
    out, attn_w = virality_attention(
        x, params, num_heads=num_heads,
        compute_dtype=jnp.float32, attn_weights_dtype=jnp.float32)
    jax.block_until_ready((out, attn_w))
    assert out.shape == (B, S, H)
    assert attn_w.shape == (B, num_heads, S, S)
    assert jnp.allclose(out, ref_out, atol=2e-3, rtol=2e-3)
    assert jnp.allclose(attn_w, ref_attn, atol=2e-3, rtol=2e-3)

    # --- output-only path (skips S^2 normalization and the attn writeback) ---
    out_only, none_attn = virality_attention(
        x, params, num_heads=num_heads, compute_dtype=jnp.float32,
        return_attn_weights=False)
    jax.block_until_ready(out_only)
    assert none_attn is None
    assert jnp.allclose(out_only, ref_out, atol=2e-3, rtol=2e-3)

    # --- default path: bf16 MXU operands + bf16 attn-weights writeback ---
    out_bf, attn_bf = virality_attention(x, params, num_heads=num_heads)
    jax.block_until_ready((out_bf, attn_bf))
    assert jnp.allclose(out_bf, ref_out, atol=5e-2, rtol=5e-2)
    assert jnp.allclose(attn_bf.astype(jnp.float32), ref_attn, atol=5e-2, rtol=5e-2)

    print("KERNEL_OK")
</pallas_src>

<mosaic_0001>
module attributes {stable_mosaic.version = 11 : i64} {
  func.func @kernel(%arg0: i32, %arg1: i32, %arg2: i32, %arg3: memref<1x8x32xf32, #tpu.memory_space<vmem>>, %arg4: memref<8x32x4xf32, #tpu.memory_space<vmem>>, %arg5: memref<8x1x4xf32, #tpu.memory_space<vmem>>, %arg6: memref<8x32x8xf32, #tpu.memory_space<vmem>>, %arg7: memref<8x1x8xf32, #tpu.memory_space<vmem>>, %arg8: memref<8x4x32xf32, #tpu.memory_space<vmem>>, %arg9: memref<1x32xf32, #tpu.memory_space<vmem>>, %arg10: memref<1x8x32xf32, #tpu.memory_space<vmem>>, %arg11: memref<1x1x8x8xf32, #tpu.memory_space<vmem>>, %arg12: memref<8x8x8xf32, #tpu.memory_space<vmem>>) attributes {dimension_semantics = [#tpu.dimension_semantics<parallel>, #tpu.dimension_semantics<arbitrary>, #tpu.dimension_semantics<arbitrary>], iteration_bounds = array<i64: 2, 1, 8>, scalar_prefetch = 0 : i64, scratch_operands = 1 : i64, tpu.core_type = #tpu.core_type<tc>, window_params = [{transform_indices = @transform_0, window_bounds = array<i64: 1, 8, 32>}, {pipeline_mode = #tpu.pipeline_mode<synchronous>, transform_indices = @transform_1, window_bounds = array<i64: 8, 32, 4>}, {pipeline_mode = #tpu.pipeline_mode<synchronous>, transform_indices = @transform_2, window_bounds = array<i64: 8, 1, 4>}, {pipeline_mode = #tpu.pipeline_mode<synchronous>, transform_indices = @transform_3, window_bounds = array<i64: 8, 32, 8>}, {pipeline_mode = #tpu.pipeline_mode<synchronous>, transform_indices = @transform_4, window_bounds = array<i64: 8, 1, 8>}, {pipeline_mode = #tpu.pipeline_mode<synchronous>, transform_indices = @transform_5, window_bounds = array<i64: 8, 4, 32>}, {pipeline_mode = #tpu.pipeline_mode<synchronous>, transform_indices = @transform_6, window_bounds = array<i64: 1, 32>}, {transform_indices = @transform_7, window_bounds = array<i64: 1, 8, 32>}, {transform_indices = @transform_8, window_bounds = array<i64: 1, 1, 8, 8>}]} {
    %c0_i32 = arith.constant 0 : i32
    %0 = arith.cmpi eq, %arg1, %c0_i32 : i32
    %1 = arith.extui %0 : i1 to i32
    %c0_i32_0 = arith.constant 0 : i32
    %2 = arith.cmpi ne, %1, %c0_i32_0 : i32
    scf.if %2 {
      %c0_29 = arith.constant 0 : index
      %c0_30 = arith.constant 0 : index
      %c0_31 = arith.constant 0 : index
      %49 = vector.load %arg3[%c0_29, %c0_30, %c0_31] : memref<1x8x32xf32, #tpu.memory_space<vmem>>, vector<1x8x32xf32>
      %50 = vector.shape_cast %49 : vector<1x8x32xf32> to vector<8x32xf32>
      %51 = arith.index_cast %arg2 : i32 to index
      %c0_32 = arith.constant 0 : index
      %c0_33 = arith.constant 0 : index
      %52 = vector.load %arg6[%51, %c0_32, %c0_33] : memref<8x32x8xf32, #tpu.memory_space<vmem>>, vector<1x32x8xf32>
      %53 = vector.shape_cast %52 : vector<1x32x8xf32> to vector<32x8xf32>
      %cst_34 = arith.constant dense<0.000000e+00> : vector<8x8xf32>
      %54 = tpu.matmul %50, %53, %cst_34 {dimension_numbers = #tpu.dot_dimension_numbers<[1], [0], [0], [1], [0, 0, 1, 1], [], []>} : vector<8x32xf32>, vector<32x8xf32>, vector<8x8xf32> -> vector<8x8xf32>
      %55 = arith.index_cast %arg2 : i32 to index
      %c0_35 = arith.constant 0 : index
      %c0_36 = arith.constant 0 : index
      %56 = vector.load %arg7[%55, %c0_35, %c0_36] : memref<8x1x8xf32, #tpu.memory_space<vmem>>, vector<1x1x8xf32>
      %57 = vector.shape_cast %56 : vector<1x1x8xf32> to vector<1x8xf32>
      %58 = vector.broadcast %57 : vector<1x8xf32> to vector<8x8xf32>
      %59 = arith.addf %54, %58 : vector<8x8xf32>
      %60 = arith.index_cast %arg2 : i32 to index
      %c0_37 = arith.constant 0 : index
      %c0_38 = arith.constant 0 : index
      %61 = vector.load %arg12[%60, %c0_37, %c0_38] : memref<8x8x8xf32, #tpu.memory_space<vmem>>, vector<1x8x8xf32>
      %62 = vector.shape_cast %61 : vector<1x8x8xf32> to vector<8x8xf32>
      %63 = vector.shape_cast %59 : vector<8x8xf32> to vector<1x8x8xf32>
      tpu.vector_store %arg12[%60, %c0_37, %c0_38], %63 {strides = array<i32>} : memref<8x8x8xf32, #tpu.memory_space<vmem>>, vector<1x8x8xf32>,
    } else {
    }
    %c0 = arith.constant 0 : index
    %c0_1 = arith.constant 0 : index
    %c0_2 = arith.constant 0 : index
    %3 = vector.load %arg3[%c0, %c0_1, %c0_2] : memref<1x8x32xf32, #tpu.memory_space<vmem>>, vector<1x8x32xf32>
    %4 = vector.shape_cast %3 : vector<1x8x32xf32> to vector<8x32xf32>
    %5 = arith.index_cast %arg2 : i32 to index
    %c0_3 = arith.constant 0 : index
    %c0_4 = arith.constant 0 : index
    %6 = vector.load %arg4[%5, %c0_3, %c0_4] : memref<8x32x4xf32, #tpu.memory_space<vmem>>, vector<1x32x4xf32>
    %7 = vector.shape_cast %6 : vector<1x32x4xf32> to vector<32x4xf32>
    %cst = arith.constant dense<0.000000e+00> : vector<8x4xf32>
    %8 = tpu.matmul %4, %7, %cst {dimension_numbers = #tpu.dot_dimension_numbers<[1], [0], [0], [1], [0, 0, 1, 1], [], []>} : vector<8x32xf32>, vector<32x4xf32>, vector<8x4xf32> -> vector<8x4xf32>
    %9 = arith.index_cast %arg2 : i32 to index
    %c0_5 = arith.constant 0 : index
    %c0_6 = arith.constant 0 : index
    %10 = vector.load %arg5[%9, %c0_5, %c0_6] : memref<8x1x4xf32, #tpu.memory_space<vmem>>, vector<1x1x4xf32>
    %11 = vector.shape_cast %10 : vector<1x1x4xf32> to vector<1x4xf32>
    %12 = vector.broadcast %11 : vector<1x4xf32> to vector<8x4xf32>
    %13 = arith.addf %8, %12 : vector<8x4xf32>
    %cst_7 = arith.constant 5.000000e-01 : f32
    %14 = vector.broadcast %cst_7 : f32 to vector<8x4xf32>
    %15 = arith.mulf %13, %14 : vector<8x4xf32>
    %16 = arith.index_cast %arg2 : i32 to index
    %c0_8 = arith.constant 0 : index
    %c0_9 = arith.constant 0 : index
    %17 = vector.load %arg12[%16, %c0_8, %c0_9] : memref<8x8x8xf32, #tpu.memory_space<vmem>>, vector<1x8x8xf32>
    %18 = vector.shape_cast %17 : vector<1x8x8xf32> to vector<8x8xf32>
    %19 = vector.extract_strided_slice %18 {offsets = [0, 0], sizes = [8, 4], strides = [1, 1]} : vector<8x8xf32> to vector<8x4xf32>
    %20 = vector.extract_strided_slice %18 {offsets = [0, 4], sizes = [8, 4], strides = [1, 1]} : vector<8x8xf32> to vector<8x4xf32>
    %cst_10 = arith.constant dense<0.000000e+00> : vector<8x8xf32>
    %21 = tpu.matmul %15, %19, %cst_10 {dimension_numbers = #tpu.dot_dimension_numbers<[1], [1], [0], [0], [0, 0, 1, 0], [], []>} : vector<8x4xf32>, vector<8x4xf32>, vector<8x8xf32> -> vector<8x8xf32>
    %cst_11 = arith.constant dense<0xFF800000> : vector<8xf32>
    %22 = vector.multi_reduction <maximumf>, %21, %cst_11 [1] : vector<8x8xf32> to vector<8xf32>
    %23 = vector.shape_cast %22 : vector<8xf32> to vector<8x1xf32>
    %24 = vector.broadcast %23 : vector<8x1xf32> to vector<8x8xf32>
    %25 = arith.subf %21, %24 : vector<8x8xf32>
    %26 = math.exp %25 : vector<8x8xf32>
    %cst_12 = arith.constant dense<0.000000e+00> : vector<8xf32>
    %27 = vector.multi_reduction <add>, %26, %cst_12 [1] : vector<8x8xf32> to vector<8xf32>
    %28 = vector.shape_cast %27 : vector<8xf32> to vector<8x1xf32>
    %29 = tpu.reciprocal %28 {approx = true} : vector<8x1xf32> -> vector<8x1xf32>
    %30 = vector.broadcast %29 : vector<8x1xf32> to vector<8x8xf32>
    %31 = arith.mulf %26, %30 : vector<8x8xf32>
    %c0_13 = arith.constant 0 : index
    %c0_14 = arith.constant 0 : index
    %c0_15 = arith.constant 0 : index
    %c0_16 = arith.constant 0 : index
    %32 = vector.load %arg11[%c0_13, %c0_14, %c0_15, %c0_16] : memref<1x1x8x8xf32, #tpu.memory_space<vmem>>, vector<1x1x8x8xf32>
    %33 = vector.shape_cast %32 : vector<1x1x8x8xf32> to vector<8x8xf32>
    %34 = vector.shape_cast %31 : vector<8x8xf32> to vector<1x1x8x8xf32>
    tpu.vector_store %arg11[%c0_13, %c0_14, %c0_15, %c0_16], %34 {strides = array<i32>} : memref<1x1x8x8xf32, #tpu.memory_space<vmem>>, vector<1x1x8x8xf32>,
    %cst_17 = arith.constant dense<0.000000e+00> : vector<8x4xf32>
    %35 = tpu.matmul %31, %20, %cst_17 {dimension_numbers = #tpu.dot_dimension_numbers<[1], [0], [0], [1], [0, 0, 1, 1], [], []>} : vector<8x8xf32>, vector<8x4xf32>, vector<8x4xf32> -> vector<8x4xf32>
    %36 = arith.index_cast %arg2 : i32 to index
    %c0_18 = arith.constant 0 : index
    %c0_19 = arith.constant 0 : index
    %37 = vector.load %arg8[%36, %c0_18, %c0_19] : memref<8x4x32xf32, #tpu.memory_space<vmem>>, vector<1x4x32xf32>
    %38 = vector.shape_cast %37 : vector<1x4x32xf32> to vector<4x32xf32>
    %cst_20 = arith.constant dense<0.000000e+00> : vector<8x32xf32>
    %39 = tpu.matmul %35, %38, %cst_20 {dimension_numbers = #tpu.dot_dimension_numbers<[1], [0], [0], [1], [0, 0, 1, 1], [], []>} : vector<8x4xf32>, vector<4x32xf32>, vector<8x32xf32> -> vector<8x32xf32>
    %c0_i32_21 = arith.constant 0 : i32
    %40 = arith.cmpi eq, %arg2, %c0_i32_21 : i32
    %41 = arith.extui %40 : i1 to i32
    %c0_i32_22 = arith.constant 0 : i32
    %42 = arith.cmpi ne, %41, %c0_i32_22 : i32
    scf.if %42 {
      %c0_29 = arith.constant 0 : index
      %c0_30 = arith.constant 0 : index
      %49 = vector.load %arg9[%c0_29, %c0_30] : memref<1x32xf32, #tpu.memory_space<vmem>>, vector<1x32xf32>
      %50 = vector.shape_cast %49 : vector<1x32xf32> to vector<1x32xf32>
      %51 = vector.broadcast %50 : vector<1x32xf32> to vector<8x32xf32>
      %c0_31 = arith.constant 0 : index
      %c0_32 = arith.constant 0 : index
      %c0_33 = arith.constant 0 : index
      %52 = vector.load %arg10[%c0_31, %c0_32, %c0_33] : memref<1x8x32xf32, #tpu.memory_space<vmem>>, vector<1x8x32xf32>
      %53 = vector.shape_cast %52 : vector<1x8x32xf32> to vector<8x32xf32>
      %54 = vector.shape_cast %51 : vector<8x32xf32> to vector<1x8x32xf32>
      tpu.vector_store %arg10[%c0_31, %c0_32, %c0_33], %54 {strides = array<i32>} : memref<1x8x32xf32, #tpu.memory_space<vmem>>, vector<1x8x32xf32>,
    } else {
    }
    %c0_23 = arith.constant 0 : index
    %c0_24 = arith.constant 0 : index
    %c0_25 = arith.constant 0 : index
    %43 = vector.load %arg10[%c0_23, %c0_24, %c0_25] : memref<1x8x32xf32, #tpu.memory_space<vmem>>, vector<1x8x32xf32>
    %44 = vector.shape_cast %43 : vector<1x8x32xf32> to vector<8x32xf32>
    %45 = arith.addf %44, %39 : vector<8x32xf32>
    %c0_26 = arith.constant 0 : index
    %c0_27 = arith.constant 0 : index
    %c0_28 = arith.constant 0 : index
    %46 = vector.load %arg10[%c0_26, %c0_27, %c0_28] : memref<1x8x32xf32, #tpu.memory_space<vmem>>, vector<1x8x32xf32>
    %47 = vector.shape_cast %46 : vector<1x8x32xf32> to vector<8x32xf32>
    %48 = vector.shape_cast %45 : vector<8x32xf32> to vector<1x8x32xf32>
    tpu.vector_store %arg10[%c0_26, %c0_27, %c0_28], %48 {strides = array<i32>} : memref<1x8x32xf32, #tpu.memory_space<vmem>>, vector<1x8x32xf32>,
    return
  }
  func.func @transform_0(%arg0: i32, %arg1: i32, %arg2: i32) -> (i32, i32, i32) {
    %c0_i32 = arith.constant 0 : i32
    %c0_i32_0 = arith.constant 0 : i32
    %c0_i32_1 = arith.constant 0 : i32
    return %arg0, %c0_i32, %c0_i32_0 : i32, i32, i32
  }
  func.func @transform_1(%arg0: i32, %arg1: i32, %arg2: i32) -> (i32, i32, i32) {
    %c0_i32 = arith.constant 0 : i32
    %c0_i32_0 = arith.constant 0 : i32
    %c0_i32_1 = arith.constant 0 : i32
    %c0_i32_2 = arith.constant 0 : i32
    return %c0_i32, %c0_i32_0, %c0_i32_1 : i32, i32, i32
  }
  func.func @transform_2(%arg0: i32, %arg1: i32, %arg2: i32) -> (i32, i32, i32) {
    %c0_i32 = arith.constant 0 : i32
    %c0_i32_0 = arith.constant 0 : i32
    %c0_i32_1 = arith.constant 0 : i32
    %c0_i32_2 = arith.constant 0 : i32
    return %c0_i32, %c0_i32_0, %c0_i32_1 : i32, i32, i32
  }
  func.func @transform_3(%arg0: i32, %arg1: i32, %arg2: i32) -> (i32, i32, i32) {
    %c0_i32 = arith.constant 0 : i32
    %c0_i32_0 = arith.constant 0 : i32
    %c0_i32_1 = arith.constant 0 : i32
    %c0_i32_2 = arith.constant 0 : i32
    return %c0_i32, %c0_i32_0, %c0_i32_1 : i32, i32, i32
  }
  func.func @transform_4(%arg0: i32, %arg1: i32, %arg2: i32) -> (i32, i32, i32) {
    %c0_i32 = arith.constant 0 : i32
    %c0_i32_0 = arith.constant 0 : i32
    %c0_i32_1 = arith.constant 0 : i32
    %c0_i32_2 = arith.constant 0 : i32
    return %c0_i32, %c0_i32_0, %c0_i32_1 : i32, i32, i32
  }
  func.func @transform_5(%arg0: i32, %arg1: i32, %arg2: i32) -> (i32, i32, i32) {
    %c0_i32 = arith.constant 0 : i32
    %c0_i32_0 = arith.constant 0 : i32
    %c0_i32_1 = arith.constant 0 : i32
    %c0_i32_2 = arith.constant 0 : i32
    return %c0_i32, %c0_i32_0, %c0_i32_1 : i32, i32, i32
  }
  func.func @transform_6(%arg0: i32, %arg1: i32, %arg2: i32) -> (i32, i32) {
    %c0_i32 = arith.constant 0 : i32
    %c0_i32_0 = arith.constant 0 : i32
    %c0_i32_1 = arith.constant 0 : i32
    return %c0_i32, %c0_i32_0 : i32, i32
  }
  func.func @transform_7(%arg0: i32, %arg1: i32, %arg2: i32) -> (i32, i32, i32) {
    %c0_i32 = arith.constant 0 : i32
    %c0_i32_0 = arith.constant 0 : i32
    return %arg0, %arg1, %c0_i32 : i32, i32, i32
  }
  func.func @transform_8(%arg0: i32, %arg1: i32, %arg2: i32) -> (i32, i32, i32, i32) {
    %c0_i32 = arith.constant 0 : i32
    %c0_i32_0 = arith.constant 0 : i32
    return %arg0, %arg2, %arg1, %c0_i32 : i32, i32, i32, i32
  }
}

</mosaic_0001>

<bundles_post_ra>
// kernel: tpu_custom_call.1
= control target key start
LH: loop header
LB: loop body
LE: loop exit
PB: predicated region body
PF: predicated region fallthrough
CT: control target
= control target key end

     0   :  { %s1271_s0 = inlined_call_operand.vmem [shape: f32[2,8,32], index: 0, kind: input, shape index: {}]   ;;  %s1272_s1 = inlined_call_operand.vmem [shape: f32[8,32,4], index: 1, kind: input, shape index: {}]   ;;  %s1273_s2 = inlined_call_operand.vmem [shape: f32[8,1,4], index: 2, kind: input, shape index: {}]   ;;  %s1274_s3 = inlined_call_operand.vmem [shape: f32[8,32,8], index: 3, kind: input, shape index: {}]   ;;  %s1275_s4 = inlined_call_operand.vmem [shape: f32[8,1,8], index: 4, kind: input, shape index: {}]   ;;  %s1276_s5 = inlined_call_operand.vmem [shape: f32[8,4,32], index: 5, kind: input, shape index: {}]   ;;  %s1277_s6 = inlined_call_operand.vmem [shape: f32[1,32], index: 6, kind: input, shape index: {}]   ;;  %s1278_s7 = inlined_call_operand.hbm [shape: f32[2,8,32], index: 7, kind: output, shape index: {0}]   ;;  %s1279_s8 = inlined_call_operand.hbm [shape: f32[2,8,8,8], index: 8, kind: output, shape index: {1}]  }
   0x1   :  { %1290 = sst [smem:[#allocation17_spill]] %s1271_s0 }
   0x2   :  { %1291 = sst [smem:[#allocation18_spill]] %s1272_s1 }
   0x3   :  { %1292 = sst [smem:[#allocation19_spill]] %s1273_s2 }
   0x4   :  { %1293 = sst [smem:[#allocation20_spill]] %s1274_s3 }
   0x5   :  { %1294 = sst [smem:[#allocation21_spill]] %s1279_s8 }
   0x6   :  { %14 = vsyncpa [#allocation4], 0 }
   0x7   :  { %16 = vsyncpa [#allocation4 + $0x1], 0 }
   0x8   :  { %17 = vsyncpa [#allocation6], 0 }
   0x9   :  { %19 = vsyncpa [#allocation6 + $0x1], 0  ;;  %s1024_s27 = smov 0   ;;  %s1026_s28 = smov 0  }
   0xa   :  { %s1028_s29 = smov 0   ;;  %s1030_s30 = smov 0  }
   0xb   :  { %s1032_s9 = smov 0   ;;  %s1034_s10 = smov 0  }
   0xc   :  { %s1036_s11 = smov 0   ;;  %s1038_s12 = smov 0  }
   0xd   :  { %s1040_s13 = smov 0   ;;  %s1042_s14 = smov 0  }
   0xe   :  { %s1044_s15 = smov 0  }
   0xf LB: > { %1295 = sst [smem:[#allocation9_spill]] %s948_s30  ;;  %s690_s16 = sadd.s32 4294967295, %s976_s15   ;;  %s976_s15 = sphi %s1044_s15, %s25_s15   ;;  %s972_s14 = sphi %s1042_s14, %s1324_s14   ;;  %s968_s13 = sphi %s1040_s13, %s1323_s13   ;;  %s964_s12 = sphi %s1038_s12, %s1322_s12   ;;  %s960_s11 = sphi %s1036_s11, %s1321_s11   ;;  %s956_s10 = sphi %s1034_s10, %s1320_s10   ;;  %s952_s9 = sphi %s1032_s9, %s1329_s9   ;;  %s948_s30 = sphi %s1030_s30, %s1328_s30   ;;  %s944_s29 = sphi %s1028_s29, %s1327_s29   ;;  %s940_s28 = sphi %s1026_s28, %s1326_s28   ;;  %s936_s27 = sphi %s1024_s27, %s1325_s27  }
  0x10   : > { %1296 = sst [smem:[#allocation10_spill]] %s956_s10  ;;  %s691_s17 = sadd.s32 4294967294, %s976_s15  }
  0x11   : > { %1297 = sst [smem:[#allocation11_spill]] %s968_s13  ;;  %s37_s18 = sadd.s32 1, %s968_s13 }
  0x12   : > { %1298 = sst [smem:[#allocation12_spill]] %s972_s14  ;;  %s44_s19 = sadd.s32 1, %s972_s14 }
  0x13   : > { %p38_p0 = scmp.ge.s32.totalorder %s37_s18, 8  ;;  %s205_s20 = sadd.s32 1, %s956_s10 }
  0x14   : > { %p215_p1 = scmp.ne.s32.totalorder %s956_s10, %s952_s9  ;;  %p1086_p2 = scmp.eq.s32.totalorder %s690_s16, 15 }
  0x15   : > { %s1331_s18 = smov (%p38_p0, %s37_s18), 0  ;;  %s1333_s19 = smov (!%p38_p0, %s44_s19), %s972_s14 }
  0x16   : > { %1300 = sst [smem:[#allocation13_spill]] %s1331_s18  ;;  %p1095_p3 = por %p1086_p2, %p215_p1 }
  0x17   : > { %p221_p4 = scmp.ne.s32.totalorder %s952_s9, %s948_s30  ;;  %p46_p5 = scmp.ge.s32.totalorder %s1333_s19, 2 }
  0x18   : > { %p1101_p6 = scmp.eq.s32.totalorder %s691_s17, 15  ;;  %s229_s24 = ssub.s32 %s968_s13, %s1331_s18 }
  0x19   : > { %s235_s25 = sadd.s32 1, %s944_s29  ;;  %s1335_s19 = smov (%p46_p5, %s1333_s19), 0 }
  0x1a   : > { %1303 = sst [smem:[#allocation14_spill]] %s1335_s19  ;;  %p1112_p7 = por %p1101_p6, %p221_p4 }
  0x1b   : > { %p245_p8 = scmp.ne.s32.totalorder %s944_s29, %s940_s28  ;;  %s200_s16 = ssub.s32 %s972_s14, %s1335_s19 }
  0x1c   : > { %p251_p9 = scmp.ne.s32.totalorder %s940_s28, %s936_s27  ;;  %p203_p10 = scmp.eq.s32.totalorder %s200_s16, 0 }
  0x1d   : > { %s230_s17 = sor.u32 %s229_s24, %s200_s16  ;;  %p1124_p12 = por %p245_p8, %p1086_p2 }
  0x1e   : > { %p233_p11 = scmp.eq.s32.totalorder %s230_s17, 0  ;;  %p1136_p13 = por %p251_p9, %p1101_p6 }
  0x1f   : > { %s1129_s18 = scalar_select %p203_p10, %s956_s10, %s205_s20  }
  0x20   : > { %s1132_s13 = scalar_select %p233_p11, %s944_s29, %s235_s25  }
  0x21   : > { %1306 = sst [smem:[#allocation15_spill]] %s1129_s18  ;;  %p694_p0 = scmp.ge.s32.totalorder %s976_s15, 1 }
  0x22   : > { %1307 = sst [smem:[#allocation16_spill]] %s1132_s13  ;;  %p295_p1 = scmp.lt.s32.totalorder %s976_s15, 17 }
  0x24   : > { %p296_p4 = pnand %p694_p0, %p295_p1 }
  0x25   : > { %s1287_s21 = sand.u32 (!%p296_p4), 1, %s952_s9   ;;  %s698_s20 = sshll.u32 (!%p296_p4), %s960_s11, 5 }
  0x26   : > { %299 = sbr.rel (%p296_p4) target bundleno = 882 (0x372), region = 48  ;;  %s1146_s24 = sshll.u32 (!%p296_p4), %s1287_s21, 3 }
  0x27   : > { %s1309_s3 = sld [smem:[#allocation20_spill]] (!%p296_p4)  ;;  %p333_p2 = scmp.lt.s32.totalorder (!%p296_p4), %s964_s12, 1 }
  0x28   : > { %s1310_s1 = sld [smem:[#allocation18_spill]] (!%p296_p4)  ;;  %s348_s13 = scalar_lea.vmem (!%p296_p4), %s1275_s4, %s960_s11 }
  0x29   : > { %s1311_s0 = sld [smem:[#allocation17_spill]] (!%p296_p4)  ;;  %s1288_s25 = sand.u32 (!%p296_p4), 1, %s940_s28  }
  0x2a   : > { %s1312_s2 = sld [smem:[#allocation19_spill]] (!%p296_p4)  ;;  %s325_s18 = scalar_lea.vmem (!%p296_p4), [#allocation3], %s1146_s24 }
  0x2b   : > { %s334_s21 = scalar_select %p333_p2, %s964_s12, 1  ;;  %vm353_vm0 = vcmask 261120   ;;  %v819_v9 = vld [vmem:[%s348_s13] ss:$0 sm:$0xff]  ;;  %vm379_vm1 = vcmask 64512   ;;  %vm421_vm2 = vcmask 31744  }
  0x2c   : > { %s707_s13 = sshll.u32 %s960_s11, 2  ;;  %vm493_vm3 = vcmask 1043456   ;;  %p710_p5 = scmp.ne.s32.totalorder %s960_s11, 0 }
  0x2d   : > { %s343_s16 = scalar_lea.vmem %s1309_s3, %s698_s20  ;;  %s697_s23 = sshll.u32 %s334_s21, 3 }
  0x2e   : > { %v347_v0 = vld [vmem:[%s343_s16 + $0x18] sm:$0xff]  ;;  %v346_v1 = vld [vmem:[%s343_s16 + $0x10] sm:$0xff]  ;;  %s383_s14 = scalar_lea.vmem %s1310_s1, %s698_s20  ;;  %v345_v2 = vld [vmem:[%s343_s16 + $0x8] sm:$0xff]  ;;  %s700_s21 = sshll.u32 %s960_s11, 3 }
  0x2f   : > { %369 = vmatpush.msra.mxu0 %v347_v0  ;;  %v387_v3 = vld [vmem:[%s383_s14 + $0x18] sm:$0xff]  ;;  %v386_v4 = vld [vmem:[%s383_s14 + $0x10] sm:$0xff]  ;;  %v344_v5 = vld [vmem:[%s343_s16] sm:$0xff]  ;;  %s336_s19 = scalar_lea.vmem %s1311_s0, %s697_s23  ;;  %s378_s3 = scalar_lea.vmem [#allocation2], %s700_s21 }
  0x30   : > { %409 = vmatpush.msra.mxu1 %v387_v3  ;;  %v385_v6 = vld [vmem:[%s383_s14 + $0x8] sm:$0xff]  ;;  %v341_v7 = vld [vmem:[%s336_s19] sm:$0xff]  ;;  %s388_s20 = scalar_lea.vmem %s1312_s2, %s960_s11  ;;  %s488_s23 = scalar_lea.vmem %s1276_s5, %s707_s13 }
  0x31   : > { %370 = vmatpush.msra.mxu0 %v346_v1  ;;  %v384_v8 = vld [vmem:[%s383_s14] sm:$0xff]  ;;  %s978_s14 = smov 124   ;;  %s1182_s19 = sshll.u32 %s1288_s25, 3 }
  0x32   : > { %410 = vmatpush.msra.mxu1 %v386_v4  ;;  %v820_v12 = vld [vmem:[%s388_s20] ss:$0 sm:$0xff]  ;;  %s1289_s10 = scalar_lea.vmem [#allocation5], %s1182_s19 }
  0x33   : > { %371 = vmatpush.msra.mxu0 %v345_v2  ;;  %v489_v25 = vld [vmem:[%s488_s23] sm:$0xf] }
  0x34   : > { %411 = vmatpush.msra.mxu1 %v385_v6 }
  0x35   : > { %372 = vmatpush.msra.mxu0 %v344_v5 }
  0x36   : > { %699 = vmatmul.msk.f32.vlgmr.msra.gmra.mxu0 %vm353_vm0, %v341_v7  ;;  %412 = vmatpush.msra.mxu1 %v384_v8 }
  0x37   : > { %702 = vmatmul.msk.f32.vlgmr.msra.gmra.mxu1 %vm353_vm0, %v341_v7 }
  0xb3   : > { %v374_v10 = vpop.f32.mrf.mxu0 }
  0xb4   : > { %v375_v11 = vadd.f32 %v819_v9, %v374_v10  ;;  %v414_v13 = vpop.f32.mrf.mxu1 }
  0xb5   : > { %v415_v14 = vadd.f32 %v820_v12, %v414_v13 }
  0xb6   : > { %380 = vst.msk [vmem:[%s378_s3] sm:$0xff] %vm379_vm1, %v375_v11 }
  0xb7   : > { %v417_v15 = vmul.f32 0.5, %v415_v14 }
  0xbd   : > { %v420_v16 = vld [vmem:[%s378_s3] sm:$0xff] }
  0xbe   : > { %461 = vrot.lane.b32.xlu1 %v420_v16, %s978_s14  ;;  %704 = vmatpush.xpose.msk.msra.mxu2 %vm421_vm2, %v420_v16 }
  0xc1   : > { %705 = vmatmul.msk.f32.vlgmr.msra.gmra.mxu2 %vm421_vm2, %v417_v15 }
 0x130   : > { %v462_v17 = vpop.permute.xlu1 %461 }
 0x131   : > { %482 = vmatpush.msra.mxu3 %v462_v17 }
 0x133   : > { %708 = vmatpush.msk.msrb.mxu3 %vm493_vm3, %v489_v25 }
 0x144   : > { %v445_v18 = vpop.f32.mrf.mxu2 }
 0x145   : > { %v449_v19 = vsel %vm379_vm1, %v445_v18, -inf }
 0x146   : > { %450 = vmax.xlane.f32.xlu0 %v449_v19 }
 0x1b9   : > { %v451_v20 = vpop.xlane.xlu0 %450 }
 0x1ba   : > { %v452_v21 = vsub.f32 %v445_v18, %v451_v20 }
 0x1bc   : > { %v453_v22 = vmul.f32 1.442695, %v452_v21 }
 0x1be   : > { %821 = vpow2.f32 %v453_v22 }
 0x1c4   : > { %v822_v23 = vpop.eup %821 }
 0x1c5   : > { %v455_v24 = vsel %vm379_vm1, %v822_v23, 0.0 }
 0x1c6   : > { %456 = vadd.xlane.f32.xlu0 %v455_v24 }
 0x239   : > { %v457_v26 = vpop.xlane.xlu0 %456 }
 0x23a   : > { %823 = vrcp.f32 %v457_v26 }
 0x240   : > { %v824_v27 = vpop.eup %823 }
 0x241   : > { %v459_v28 = vmul.f32 %v824_v27, %v822_v23 }
 0x243   : > { %460 = vst.msk [vmem:[%s1289_s10] sm:$0xff] %vm379_vm1, %v459_v28  ;;  %706 = vmatmul.msk.f32.vlgmr.msra.gmra.mxu3 %vm379_vm1, %v459_v28 }
 0x2c6   : > { %v484_v29 = vpop.f32.mrf.mxu3 }
 0x2c7   : > { %709 = vmatmul.msk.f32.vlgmr.msrb.gmra.mxu3 %vm421_vm2, %v484_v29 }
 0x346   : > { %520 = sbr.rel (%p710_p5) target bundleno = 845 (0x34d), region = 56 }
 0x34a   : > { %v514_v30 = vpop.f32.mrf.mxu3 }
 0x34b   : > { %v825_v31 = vld [vmem:[%s1277_s6] ss:$0 sm:$0xff] }
 0x34c   : > { %525 = vst.msk [vmem:[%s325_s18] sm:$0xff] %vm353_vm0, %v825_v31 }
 0x34d PF: > { %s713_s3 = sshll.u32 %s964_s12, 3  ;;  %s548_s16 = sshll.u32 %s325_s18, 4  ;;  %s549_s16 = int_to_ptr.vmem [resolvable:$true] %s548_s16 }
 0x34e   : > { %s546_s24 = scalar_lea.hbm %s1278_s7, %s713_s3  ;;  %s1313_s23 = sand.u32 1, %s952_s9  }
 0x34f   : > { %s550_s17 = sshll.u32 %s546_s24, 4  ;;  %s530_s20 = scalar_lea.sflag [#allocation4], %s1313_s23  ;;  %s551_s17 = int_to_ptr.hbm [resolvable:$true] %s550_s17 }
 0x350   : > { %s840_s21 = sshra.s32 %s551_s17, 4  ;;  %s846_s14 = scalar_lea.hbm %s1278_s7, 16  ;;  %s841_s21 = int_to_ptr.hbm [resolvable:$true] %s840_s21 }
 0x351   : > { %s842_s25 = scalar_lea.hbm %s841_s21, 8  ;;  %p847_p10 = scmp.lt.s32.totalorder %s841_s21, %s1278_s7 }
 0x352   : > { %p843_p6 = scmp.ne.s32.totalorder %s841_s21, %s842_s25  ;;  %p848_p11 = scmp.lt.s32.totalorder %s846_s14, %s842_s25 }
 0x353   : > { %v526_v32 = vld [vmem:[%s325_s18] sm:$0xff] }
 0x354   : > { %v527_v33 = vadd.f32 %v526_v32, %v514_v30  ;;  %p844_p8 = pnand %p843_p6, %p1095_p3  ;;  %p849_p0 = por %p848_p11, %p847_p10 }
 0x356   : > { %528 = vst.msk [vmem:[%s325_s18] sm:$0xff] %vm353_vm0, %v527_v33  ;;  %p845_p9 = pneg %p844_p8 }
 0x358   : > { %p850_p1 = pnand %p849_p0, %p845_p9 }
 0x35a   : > { %853 = shalt.err (!%p850_p1)
}
 0x35b   : > { %718 = dma.vmem_to_hbm [thread:$0]  (%p1095_p3), %s549_s16, 128, %s551_s17, %s530_s20  }
 0x35c   : > { %s561_s18 = sadd.s32 %s960_s11, %s713_s3  ;;  %s1314_s24 = scalar_lea.vmem [#allocation5], %s1182_s19 }
 0x35d   : > { %s565_s23 = sshll.u32 %s1314_s24, 4  ;;  %s715_s10 = sshll.u32 %s561_s18, 3  ;;  %s566_s23 = int_to_ptr.vmem [resolvable:$true] %s565_s23 }
 0x35e   : > { %s1315_s2 = sld [smem:[#allocation21_spill]]  ;;  %s1316_s21 = sand.u32 1, %s940_s28  }
 0x35f   : > { %s535_s14 = scalar_lea.sflag [#allocation6], %s1316_s21 }
 0x364   : > { %s563_s0 = scalar_lea.hbm %s1315_s2, %s715_s10  ;;  %s874_s3 = scalar_lea.hbm %s1315_s2, 128 }
 0x365   : > { %s567_s25 = sshll.u32 %s563_s0, 4  ;;  %s568_s25 = int_to_ptr.hbm [resolvable:$true] %s567_s25 }
 0x366   : > { %s868_s13 = sshra.s32 %s568_s25, 4  ;;  %s869_s13 = int_to_ptr.hbm [resolvable:$true] %s868_s13 }
 0x367   : > { %s870_s22 = scalar_lea.hbm %s869_s13, 8  ;;  %p875_p5 = scmp.lt.s32.totalorder %s869_s13, %s1315_s2 }
 0x368   : > { %p871_p4 = scmp.ne.s32.totalorder %s869_s13, %s870_s22  ;;  %p876_p6 = scmp.lt.s32.totalorder %s874_s3, %s870_s22 }
 0x36a   : > { %p872_p2 = pnand %p871_p4, %p1124_p12  ;;  %p877_p8 = por %p876_p6, %p875_p5 }
 0x36c   : > { %p873_p3 = pneg %p872_p2 }
 0x36e   : > { %p878_p9 = pnand %p877_p8, %p873_p3 }
 0x370   : > { %881 = shalt.err (!%p878_p9)
}
 0x371   : > { %719 = dma.vmem_to_hbm [thread:$0]  (%p1124_p12), %s566_s23, 128, %s568_s25, %s535_s14  }
 0x372 PF: > { %s1317_s1 = sld [smem:[#allocation9_spill]]  ;;  %p729_p10 = scmp.ge.s32.totalorder %s976_s15, 2 }
 0x374   : > { %p723_p11 = pnand %p729_p10, %p1112_p7 }
 0x376   : > { %p724_p0 = pneg %p723_p11 }
 0x378   : > { %s579_s20 = sand.u32 1, %s1317_s1  }
 0x379   : > { %s580_s18 = scalar_lea.sflag [#allocation4], %s579_s20 }
 0x37a   : > { %927 = dma.done.wait (%p724_p0), %s580_s18, 128  }
 0x37b   : > { %929 = vsyncadd (%p724_p0), %s580_s18, 4294967168  ;;  %s589_s24 = sand.u32 1, %s936_s27   ;;  %p726_p1 = pnand %p729_p10, %p1136_p13 }
 0x37c   : > { %s590_s30 = scalar_lea.sflag [#allocation6], %s589_s24 }
 0x37d   : > { %p727_p4 = pneg %p726_p1 }
 0x37f   : > { %931 = dma.done.wait (%p727_p4), %s590_s30, 128  }
 0x380   : > { %933 = vsyncadd (%p727_p4), %s590_s30, 4294967168  ;;  %s25_s15 = sadd.s32 1, %s976_s15   ;;  %s1318_s26 = sld [smem:[#allocation16_spill]] }
 0x381   : > { %p22_p12 = scmp.ge.s32.totalorder %s25_s15, 18   ;;  %s1319_s23 = sld [smem:[#allocation10_spill]] }
 0x382   : > { %s1320_s10 = sld [smem:[#allocation15_spill]]  ;;  %s1325_s27 = smov %s940_s28 }
 0x383   : > { %s1321_s11 = sld [smem:[#allocation11_spill]]  ;;  %s1326_s28 = smov %s944_s29 }
 0x384   : > { %s1322_s12 = sld [smem:[#allocation12_spill]]  ;;  %s1328_s30 = smov %s952_s9 }
 0x385   : > { %s1323_s13 = sld [smem:[#allocation13_spill]]  ;;  %24 = sbr.rel (!%p22_p12) target bundleno = 15 (0xf), region = 115 }
 0x386   : > { %s1324_s14 = sld [smem:[#allocation14_spill]]  ;;  %s1327_s29 = smov %s1318_s26 }
 0x387   : > { %s1329_s9 = smov %s1319_s23 }
 0x38a   :  { %596 = vsyncpa [#allocation4], 1 }
 0x38b   :  { %598 = vsyncpa [#allocation4 + $0x1], 1 }
 0x38c   :  { %599 = vsyncpa [#allocation6], 1 }
 0x38d   :  { %601 = vsyncpa [#allocation6 + $0x1], 1 }

</bundles_post_ra>
